<compile_context>
chip_gen: v7x
topology: tpu7x:2x2x1
jax: 0.10.0
libtpu: 0.0.40
codegen_flags: <defaults>
</compile_context>

<pallas_src>
import functools

import jax
import jax.numpy as jnp
from jax.experimental import pallas as pl
from jax.experimental.pallas import tpu as pltpu


def _bigram_tile_kernel(idx_ref, tgt_ref, emb_ref, logits_ref, rowloss_ref, *,
                        n_true):
    """One (TILE_N, V_pad) tile of the bigram forward pass."""
    tile_n, v_pad = logits_ref.shape

    idx = idx_ref[...]                                   # (TILE_N, 1) int32
    tgt = tgt_ref[...]                                   # (TILE_N, 1) int32
    emb = emb_ref[...]                                   # (V_pad, V_pad) f32

    # Embedding lookup as one-hot(idx) @ table on the MXU (exact: 0/1 LHS).
    cols = jax.lax.broadcasted_iota(jnp.int32, (tile_n, v_pad), 1)
    onehot = (cols == idx).astype(jnp.float32)           # (TILE_N, V_pad)
    logits = jnp.dot(onehot, emb,
                     preferred_element_type=jnp.float32)  # (TILE_N, V_pad)
    logits_ref[...] = logits

    # Cross-entropy per row: logsumexp(logits) - logits[target].
    # Padded vocab columns carry -1e9 from the table padding -> exp underflows
    # to exactly 0, so they do not perturb the logsumexp.
    m = jnp.max(logits, axis=-1, keepdims=True)
    lse = jnp.log(jnp.sum(jnp.exp(logits - m), axis=-1, keepdims=True)) + m
    correct = jnp.sum(jnp.where(cols == tgt, logits, 0.0),
                      axis=-1, keepdims=True)

    # Mask out padded rows so the wrapper's sum/N_true gives the true mean.
    row = (pl.program_id(0) * tile_n
           + jax.lax.broadcasted_iota(jnp.int32, (tile_n, 1), 0))
    valid = row < n_true
    rowloss_ref[...] = jnp.where(valid, lse - correct, 0.0)


def _pick_tile_n(n):
    """MXU-sized M tile: 128 on v5e, 256 on v6e/v7x (128 for tiny N)."""
    if n <= 128:
        return 128
    try:
        kind = jax.devices()[0].device_kind.lower()
    except Exception:  # pragma: no cover - defensive
        kind = ""
    return 128 if "v5" in kind else 256


def bigram_forward(idx, targets, emb_table, tile_n=None):
    """idx, targets: (B, T) int; emb_table: (V, V) f32.

    Matches the PyTorch module: returns (logits.view(B*T, V), mean CE loss)
    when targets is given, else ((B, T, V) logits, None).
    """
    B, T = idx.shape
    V = emb_table.shape[0]
    N = B * T

    logits_only = targets is None
    if logits_only:
        targets = jnp.zeros((B, T), dtype=jnp.int32)

    if tile_n is None:
        tile_n = _pick_tile_n(N)

    n_pad = ((N + tile_n - 1) // tile_n) * tile_n
    v_pad = ((V + 127) // 128) * 128
    n_tiles = n_pad // tile_n

    # Pad the table: extra vocab rows (never selected) with 0, extra logit
    # columns with a large negative so they drop out of the softmax.
    NEG = -1e9
    emb_p = jnp.pad(emb_table.astype(jnp.float32), ((0, v_pad - V), (0, 0)))
    emb_p = jnp.pad(emb_p, ((0, 0), (0, v_pad - V)), constant_values=NEG)

    idx_flat = jnp.pad(idx.reshape(N).astype(jnp.int32),
                       (0, n_pad - N)).reshape(n_pad, 1)
    tgt_flat = jnp.pad(targets.reshape(N).astype(jnp.int32),
                       (0, n_pad - N)).reshape(n_pad, 1)

    # VMEM budget: resident table + double-buffered streaming blocks + slack.
    # Cap at 64 MiB so the same setting is valid on v7x; for V >~ 2048 the
    # table should be stored bf16 or tiled over the output-V dim instead.
    emb_bytes = v_pad * v_pad * 4
    stream_bytes = tile_n * (v_pad + 3) * 4
    vmem_limit = min(max(2 * (emb_bytes + stream_bytes) + (4 << 20), 32 << 20),
                     64 << 20)

    logits_pad, rowloss = pl.pallas_call(
        functools.partial(_bigram_tile_kernel, n_true=N),
        grid=(n_tiles,),
        in_specs=[
            pl.BlockSpec((tile_n, 1), lambda i: (i, 0)),       # idx tile
            pl.BlockSpec((tile_n, 1), lambda i: (i, 0)),       # target tile
            pl.BlockSpec((v_pad, v_pad), lambda i: (0, 0)),    # resident table
        ],
        out_specs=(
            pl.BlockSpec((tile_n, v_pad), lambda i: (i, 0)),   # logits tile
            pl.BlockSpec((tile_n, 1), lambda i: (i, 0)),       # per-row loss
        ),
        out_shape=(
            jax.ShapeDtypeStruct((n_pad, v_pad), jnp.float32),
            jax.ShapeDtypeStruct((n_pad, 1), jnp.float32),
        ),
        compiler_params=pltpu.CompilerParams(
            dimension_semantics=("parallel",),
            vmem_limit_bytes=vmem_limit,
        ),
    )(idx_flat, tgt_flat, emb_p)

    logits = logits_pad[:N, :V]
    if logits_only:
        return logits.reshape(B, T, V), None
    loss = jnp.sum(rowloss) / N   # padded rows contribute exactly 0
    return logits, loss


if __name__ == "__main__":
    # Small deterministic setup: vocab_size=65 (tiny-Shakespeare-like, also
    # exercises the V->128 padding path), batch=2, seq=8.
    V, B, T = 65, 2, 8
    key = jax.random.PRNGKey(0)
    k_emb, k_idx, k_tgt = jax.random.split(key, 3)

    # nn.Embedding default init: N(0, 1).
    emb_table = jax.random.normal(k_emb, (V, V), dtype=jnp.float32)
    idx = jax.random.randint(k_idx, (B, T), 0, V, dtype=jnp.int32)
    targets = jax.random.randint(k_tgt, (B, T), 0, V, dtype=jnp.int32)

    logits, loss = bigram_forward(idx, targets, emb_table)
    jax.block_until_ready((logits, loss))

    # Pure-JAX reference check.
    ref_logits = emb_table[idx.reshape(-1)]
    ref_lse = jax.nn.logsumexp(ref_logits, axis=-1)
    ref_correct = jnp.take_along_axis(
        ref_logits, targets.reshape(-1, 1), axis=-1)[:, 0]
    ref_loss = jnp.mean(ref_lse - ref_correct)

    assert logits.shape == (B * T, V), f"bad logits shape {logits.shape}"
    assert jnp.allclose(logits, ref_logits, atol=1e-5), "logits mismatch"
    assert jnp.allclose(loss, ref_loss, atol=1e-5), "loss mismatch"

    # Also check the targets=None path (logits-only, shaped (B, T, V)).
    logits3, loss_none = bigram_forward(idx, None, emb_table)
    jax.block_until_ready(logits3)
    assert loss_none is None
    assert jnp.allclose(logits3.reshape(B * T, V), ref_logits, atol=1e-5)

    print("KERNEL_OK")
</pallas_src>

<mosaic_0001>
module attributes {stable_mosaic.version = 11 : i64} {
  func.func @_bigram_tile_kernel(%arg0: i32, %arg1: memref<128x1xi32, #tpu.memory_space<vmem>>, %arg2: memref<128x1xi32, #tpu.memory_space<vmem>>, %arg3: memref<128x128xf32, #tpu.memory_space<vmem>>, %arg4: memref<128x128xf32, #tpu.memory_space<vmem>>, %arg5: memref<128x1xf32, #tpu.memory_space<vmem>>) attributes {dimension_semantics = [#tpu.dimension_semantics<parallel>], iteration_bounds = array<i64: 1>, scalar_prefetch = 0 : i64, scratch_operands = 0 : i64, tpu.core_type = #tpu.core_type<tc>, window_params = [{transform_indices = @transform_0, window_bounds = array<i64: 128, 1>}, {transform_indices = @transform_1, window_bounds = array<i64: 128, 1>}, {pipeline_mode = #tpu.pipeline_mode<synchronous>, transform_indices = @transform_2, window_bounds = array<i64: 128, 128>}, {transform_indices = @transform_3, window_bounds = array<i64: 128, 128>}, {transform_indices = @transform_4, window_bounds = array<i64: 128, 1>}]} {
    %c0 = arith.constant 0 : index
    %c0_0 = arith.constant 0 : index
    %0 = vector.load %arg1[%c0, %c0_0] : memref<128x1xi32, #tpu.memory_space<vmem>>, vector<128x1xi32>
    %c0_1 = arith.constant 0 : index
    %c0_2 = arith.constant 0 : index
    %1 = vector.load %arg2[%c0_1, %c0_2] : memref<128x1xi32, #tpu.memory_space<vmem>>, vector<128x1xi32>
    %c0_3 = arith.constant 0 : index
    %c0_4 = arith.constant 0 : index
    %2 = vector.load %arg3[%c0_3, %c0_4] : memref<128x128xf32, #tpu.memory_space<vmem>>, vector<128x128xf32>
    %3 = tpu.iota {dimensions = array<i32: 1>} : vector<128x128xi32>
    %4 = vector.broadcast %0 : vector<128x1xi32> to vector<128x128xi32>
    %5 = arith.cmpi eq, %3, %4 : vector<128x128xi32>
    %6 = arith.extui %5 : vector<128x128xi1> to vector<128x128xi32>
    %7 = arith.sitofp %6 : vector<128x128xi32> to vector<128x128xf32>
    %cst = arith.constant dense<0.000000e+00> : vector<128x128xf32>
    %8 = tpu.matmul %7, %2, %cst {dimension_numbers = #tpu.dot_dimension_numbers<[1], [0], [0], [1], [0, 0, 1, 1], [], []>} : vector<128x128xf32>, vector<128x128xf32>, vector<128x128xf32> -> vector<128x128xf32>
    %c0_5 = arith.constant 0 : index
    %c0_6 = arith.constant 0 : index
    %9 = vector.load %arg4[%c0_5, %c0_6] : memref<128x128xf32, #tpu.memory_space<vmem>>, vector<128x128xf32>
    tpu.vector_store %arg4[%c0_5, %c0_6], %8 {strides = array<i32>} : memref<128x128xf32, #tpu.memory_space<vmem>>, vector<128x128xf32>,
    %cst_7 = arith.constant dense<0xFF800000> : vector<128xf32>
    %10 = vector.multi_reduction <maximumf>, %8, %cst_7 [1] : vector<128x128xf32> to vector<128xf32>
    %11 = vector.shape_cast %10 : vector<128xf32> to vector<128x1xf32>
    %12 = vector.broadcast %11 : vector<128x1xf32> to vector<128x128xf32>
    %13 = arith.subf %8, %12 : vector<128x128xf32>
    %14 = math.exp %13 : vector<128x128xf32>
    %cst_8 = arith.constant dense<0.000000e+00> : vector<128xf32>
    %15 = vector.multi_reduction <add>, %14, %cst_8 [1] : vector<128x128xf32> to vector<128xf32>
    %16 = vector.shape_cast %15 : vector<128xf32> to vector<128x1xf32>
    %17 = math.log %16 : vector<128x1xf32>
    %18 = arith.addf %17, %11 : vector<128x1xf32>
    %19 = vector.broadcast %1 : vector<128x1xi32> to vector<128x128xi32>
    %20 = arith.cmpi eq, %3, %19 : vector<128x128xi32>
    %cst_9 = arith.constant 0.000000e+00 : f32
    %21 = vector.broadcast %cst_9 : f32 to vector<128x128xf32>
    %22 = arith.select %20, %8, %21 : vector<128x128xi1>, vector<128x128xf32>
    %cst_10 = arith.constant dense<0.000000e+00> : vector<128xf32>
    %23 = vector.multi_reduction <add>, %22, %cst_10 [1] : vector<128x128xf32> to vector<128xf32>
    %24 = vector.shape_cast %23 : vector<128xf32> to vector<128x1xf32>
    %c128_i32 = arith.constant 128 : i32
    %25 = arith.muli %arg0, %c128_i32 : i32
    %26 = tpu.iota {dimensions = array<i32: 0>} : vector<128x1xi32>
    %27 = vector.broadcast %25 : i32 to vector<128x1xi32>
    %28 = arith.addi %27, %26 : vector<128x1xi32>
    %c16_i32 = arith.constant 16 : i32
    %29 = vector.broadcast %c16_i32 : i32 to vector<128x1xi32>
    %30 = arith.cmpi slt, %28, %29 : vector<128x1xi32>
    %31 = arith.subf %18, %24 : vector<128x1xf32>
    %cst_11 = arith.constant 0.000000e+00 : f32
    %32 = vector.broadcast %cst_11 : f32 to vector<128x1xf32>
    %33 = arith.select %30, %31, %32 : vector<128x1xi1>, vector<128x1xf32>
    %c0_12 = arith.constant 0 : index
    %c0_13 = arith.constant 0 : index
    %34 = vector.load %arg5[%c0_12, %c0_13] : memref<128x1xf32, #tpu.memory_space<vmem>>, vector<128x1xf32>
    tpu.vector_store %arg5[%c0_12, %c0_13], %33 {strides = array<i32>} : memref<128x1xf32, #tpu.memory_space<vmem>>, vector<128x1xf32>,
    return
  }
  func.func @transform_0(%arg0: i32) -> (i32, i32) {
    %c0_i32 = arith.constant 0 : i32
    %c0_i32_0 = arith.constant 0 : i32
    return %arg0, %c0_i32 : i32, i32
  }
  func.func @transform_1(%arg0: i32) -> (i32, i32) {
    %c0_i32 = arith.constant 0 : i32
    %c0_i32_0 = arith.constant 0 : i32
    return %arg0, %c0_i32 : i32, i32
  }
  func.func @transform_2(%arg0: i32) -> (i32, i32) {
    %c0_i32 = arith.constant 0 : i32
    %c0_i32_0 = arith.constant 0 : i32
    %c0_i32_1 = arith.constant 0 : i32
    return %c0_i32, %c0_i32_0 : i32, i32
  }
  func.func @transform_3(%arg0: i32) -> (i32, i32) {
    %c0_i32 = arith.constant 0 : i32
    %c0_i32_0 = arith.constant 0 : i32
    return %arg0, %c0_i32 : i32, i32
  }
  func.func @transform_4(%arg0: i32) -> (i32, i32) {
    %c0_i32 = arith.constant 0 : i32
    %c0_i32_0 = arith.constant 0 : i32
    return %arg0, %c0_i32 : i32, i32
  }
}

</mosaic_0001>

<bundles_post_ra>
// kernel: tpu_custom_call.1
= control target key start
LH: loop header
LB: loop body
LE: loop exit
PB: predicated region body
PF: predicated region fallthrough
CT: control target
= control target key end

     0   :  { %v924_v1 = vmov 0   ;;  %s1157_s0 = inlined_call_operand.vmem [shape: s32[128,1], index: 0, kind: input, shape index: {}]   ;;  %s1158_s1 = inlined_call_operand.vmem [shape: s32[128,1], index: 1, kind: input, shape index: {}]   ;;  %s1159_s2 = inlined_call_operand.vmem [shape: f32[128,128], index: 2, kind: input, shape index: {}]   ;;  %s1160_s3 = inlined_call_operand.hbm [shape: f32[128,128], index: 3, kind: output, shape index: {0}]   ;;  %s1161_s4 = inlined_call_operand.vmem [shape: f32[128,1], index: 4, kind: output, shape index: {1}]  }
   0x1   :  { %v17_v0 = vld [vmem:[%s1157_s0] sm:$0xff]  ;;  %890 = vset.pattern.permute.xlu0 %v924_v1  ;;  %891 = vset.pattern.permute.xlu1 %v924_v1  ;;  %v18_v2 = vld [vmem:[%s1157_s0 + $0x8] sm:$0xff]  ;;  %v51_v5 = vld [vmem:[%s1159_s2 + $0x10] sm:$0xff] }
   0x2   :  { %68 = vperm.xlu0 %890, %v17_v0   ;;  %v49_v3 = vld [vmem:[%s1159_s2] sm:$0xff]  ;;  %v50_v4 = vld [vmem:[%s1159_s2 + $0x8] sm:$0xff]  ;;  %v52_v6 = vld [vmem:[%s1159_s2 + $0x18] sm:$0xff] }
   0x3   :  { %v836_v7 = vpack.c.bf16 %v50_v4, %v49_v3  ;;  %v840_v8 = vpack.c.bf16 %v52_v6, %v51_v5  ;;  %v53_v9 = vld [vmem:[%s1159_s2 + $0x20] sm:$0xff]  ;;  %v54_v10 = vld [vmem:[%s1159_s2 + $0x28] sm:$0xff]  ;;  %v19_v11 = vld [vmem:[%s1157_s0 + $0x10] sm:$0xff] }
   0x4   :  { %v844_v12 = vpack.c.bf16 %v54_v10, %v53_v9 }
   0x5   :  { %837 = vmatprep.subr.bf16.mxu0 %v836_v7  ;;  %868 = vmatprep.subr.bf16.mxu1 %v836_v7 }
   0x6   :  { %71 = vperm.xlu0 %890, %v18_v2   ;;  %839 = vmatpush3.bf16.msra.mxu0 %v836_v7 }
   0x7   :  { %841 = vmatprep.subr.bf16.mxu0 %v840_v8  ;;  %876 = vmatpush3.bf16.msra.mxu1 %v836_v7 }
   0x8   :  { %10 = vsyncpa [#allocation3], 0  ;;  %v55_v13 = vld [vmem:[%s1159_s2 + $0x30] sm:$0xff]  ;;  %v56_v14 = vld [vmem:[%s1159_s2 + $0x38] sm:$0xff]  ;;  %869 = vmatprep.subr.bf16.mxu1 %v840_v8  ;;  %v65_v41 = vlaneseq  ;;  %v925_v44 = vmov 1.0   ;;  %s927_s28 = smov [#allocation2]  }
   0x9   :  { %v20_v15 = vld [vmem:[%s1157_s0 + $0x18] sm:$0xff]  ;;  %v848_v16 = vpack.c.bf16 %v56_v14, %v55_v13  ;;  %v57_v17 = vld [vmem:[%s1159_s2 + $0x40] sm:$0xff]  ;;  %v58_v18 = vld [vmem:[%s1159_s2 + $0x48] sm:$0xff] }
   0xa   :  { %74 = vperm.xlu0 %890, %v19_v11   ;;  %843 = vmatpush3.bf16.msra.mxu0 %v840_v8  ;;  %v21_v19 = vld [vmem:[%s1157_s0 + $0x20] sm:$0xff]  ;;  %v852_v20 = vpack.c.bf16 %v58_v18, %v57_v17  ;;  %v59_v21 = vld [vmem:[%s1159_s2 + $0x50] sm:$0xff]  ;;  %v60_v22 = vld [vmem:[%s1159_s2 + $0x58] sm:$0xff]  ;;  %v1051_v42 = vand.u32 127, %v65_v41 }
   0xb   :  { %845 = vmatprep.subr.bf16.mxu0 %v844_v12  ;;  %877 = vmatpush3.bf16.msra.mxu1 %v840_v8  ;;  %v22_v23 = vld [vmem:[%s1157_s0 + $0x28] sm:$0xff]  ;;  %v856_v24 = vpack.c.bf16 %v60_v22, %v59_v21  ;;  %v61_v25 = vld [vmem:[%s1159_s2 + $0x60] sm:$0xff]  ;;  %v23_v27 = vld [vmem:[%s1157_s0 + $0x30] sm:$0xff] }
   0xc   :  { %870 = vmatprep.subr.bf16.mxu1 %v844_v12  ;;  %v62_v26 = vld [vmem:[%s1159_s2 + $0x68] sm:$0xff]  ;;  %v63_v29 = vld [vmem:[%s1159_s2 + $0x70] sm:$0xff]  ;;  %v64_v30 = vld [vmem:[%s1159_s2 + $0x78] sm:$0xff] }
   0xd   :  { %v860_v28 = vpack.c.bf16 %v62_v26, %v61_v25  ;;  %v24_v31 = vld [vmem:[%s1157_s0 + $0x38] sm:$0xff]  ;;  %v864_v32 = vpack.c.bf16 %v64_v30, %v63_v29  ;;  %v25_v33 = vld [vmem:[%s1157_s0 + $0x40] sm:$0xff]  ;;  %v26_v34 = vld [vmem:[%s1157_s0 + $0x48] sm:$0xff]  ;;  %v926_v26 = vmov 0.0  }
   0xe   :  { %77 = vperm.xlu0 %890, %v20_v15   ;;  %847 = vmatpush3.bf16.msra.mxu0 %v844_v12  ;;  %v27_v35 = vld [vmem:[%s1157_s0 + $0x50] sm:$0xff]  ;;  %v28_v36 = vld [vmem:[%s1157_s0 + $0x58] sm:$0xff]  ;;  %v29_v37 = vld [vmem:[%s1157_s0 + $0x60] sm:$0xff] }
   0xf   :  { %849 = vmatprep.subr.bf16.mxu0 %v848_v16  ;;  %878 = vmatpush3.bf16.msra.mxu1 %v844_v12  ;;  %v30_v38 = vld [vmem:[%s1157_s0 + $0x68] sm:$0xff]  ;;  %v31_v39 = vld [vmem:[%s1157_s0 + $0x70] sm:$0xff]  ;;  %v32_v40 = vld [vmem:[%s1157_s0 + $0x78] sm:$0xff] }
  0x10   :  { %871 = vmatprep.subr.bf16.mxu1 %v848_v16  ;;  %92 = vperm.xlu1 %891, %v25_v33   ;;  %v34_v0 = vld [vmem:[%s1158_s1 + $0x8] sm:$0xff]  ;;  %v33_v3 = vld [vmem:[%s1158_s1] sm:$0xff]  ;;  %s701_s1 = sshll.u32 %s927_s28, 4  ;;  %s702_s1 = int_to_ptr.vmem [resolvable:$true] %s701_s1 }
  0x11   :  { %s900_s29 = scalar_lea.vmem %s702_s1, 2048  ;;  %p905_p1 = scmp.lt.s32.totalorder %s702_s1, %s702_s1 }
  0x12   :  { %80 = vperm.xlu0 %890, %v21_v19   ;;  %851 = vmatpush3.bf16.msra.mxu0 %v848_v16  ;;  %p901_p0 = scmp.ne.s32.totalorder %s702_s1, %s900_s29  ;;  %p906_p2 = scmp.lt.s32.totalorder %s900_s29, %s900_s29 }
  0x13   :  { %853 = vmatprep.subr.bf16.mxu0 %v852_v20  ;;  %879 = vmatpush3.bf16.msra.mxu1 %v848_v16 }
  0x14   :  { %872 = vmatprep.subr.bf16.mxu1 %v852_v20  ;;  %95 = vperm.xlu1 %891, %v26_v34   ;;  %p907_p3 = por %p906_p2, %p905_p1 }
  0x16   :  { %83 = vperm.xlu0 %890, %v22_v23   ;;  %855 = vmatpush3.bf16.msra.mxu0 %v852_v20  ;;  %p908_p4 = pnand %p907_p3, %p901_p0 }
  0x17   :  { %857 = vmatprep.subr.bf16.mxu0 %v856_v24  ;;  %880 = vmatpush3.bf16.msra.mxu1 %v852_v20 }
  0x18   :  { %873 = vmatprep.subr.bf16.mxu1 %v856_v24  ;;  %98 = vperm.xlu1 %891, %v27_v35  }
  0x1a   :  { %86 = vperm.xlu0 %890, %v23_v27   ;;  %859 = vmatpush3.bf16.msra.mxu0 %v856_v24 }
  0x1b   :  { %861 = vmatprep.subr.bf16.mxu0 %v860_v28  ;;  %881 = vmatpush3.bf16.msra.mxu1 %v856_v24 }
  0x1c   :  { %874 = vmatprep.subr.bf16.mxu1 %v860_v28  ;;  %101 = vperm.xlu1 %891, %v28_v36  }
  0x1e   :  { %89 = vperm.xlu0 %890, %v24_v31   ;;  %863 = vmatpush3.bf16.msra.mxu0 %v860_v28 }
  0x1f   :  { %865 = vmatprep.subr.bf16.mxu0 %v864_v32  ;;  %882 = vmatpush3.bf16.msra.mxu1 %v860_v28 }
  0x20   :  { %875 = vmatprep.subr.bf16.mxu1 %v864_v32  ;;  %104 = vperm.xlu1 %891, %v29_v37  }
  0x22   :  { %867 = vmatpush3.bf16.msra.mxu0 %v864_v32 }
  0x23   :  { %883 = vmatpush3.bf16.msra.mxu1 %v864_v32 }
  0x24   :  { %107 = vperm.xlu1 %891, %v30_v38  }
  0x28   :  { %110 = vperm.xlu1 %891, %v31_v39  }
  0x2c   :  { %113 = vperm.xlu1 %891, %v32_v40  }
  0x81   :  { %v69_v43 = vpop.permute.xlu0 %68 }
  0x82   :  { %vm115_vm0 = vcmp.eq.s32.totalorder %v1051_v42, %v69_v43 }
  0x83   :  { %812 = vmatprep.mubr.msk.f32.mxu0 %vm115_vm0, %v925_v44 }
  0x85   :  { %v72_v45 = vpop.permute.xlu0 %71 }
  0x86   :  { %vm116_vm1 = vcmp.eq.s32.totalorder %v1051_v42, %v72_v45 }
  0x87   :  { %813 = vmatmul.mubr.msk.f32.vlgmr.msra.gmra.mrb[0].mxu0 %vm116_vm1, %v925_v44 }
  0x89   :  { %v75_v46 = vpop.permute.xlu0 %74 }
  0x8a   :  { %vm117_vm2 = vcmp.eq.s32.totalorder %v1051_v42, %v75_v46 }
  0x8b   :  { %815 = vmatprep.mubr.msk.f32.mxu0 %vm117_vm2, %v925_v44  ;;  %vm679_vm2 = vcmask 7168  }
  0x8c   :  { %682 = vst.msk [vmem:[%s1161_s4 + $0x10] sm:$0xff] %vm679_vm2, %v926_v26  ;;  %683 = vst.msk [vmem:[%s1161_s4 + $0x18] sm:$0xff] %vm679_vm2, %v926_v26 }
  0x8d   :  { %v78_v47 = vpop.permute.xlu0 %77  ;;  %684 = vst.msk [vmem:[%s1161_s4 + $0x20] sm:$0xff] %vm679_vm2, %v926_v26  ;;  %685 = vst.msk [vmem:[%s1161_s4 + $0x28] sm:$0xff] %vm679_vm2, %v926_v26 }
  0x8e   :  { %vm118_vm3 = vcmp.eq.s32.totalorder %v1051_v42, %v78_v47  ;;  %686 = vst.msk [vmem:[%s1161_s4 + $0x30] sm:$0xff] %vm679_vm2, %v926_v26  ;;  %687 = vst.msk [vmem:[%s1161_s4 + $0x38] sm:$0xff] %vm679_vm2, %v926_v26 }
  0x8f   :  { %816 = vmatmul.mubr.msk.f32.gmra.mrb[2].mxu0 %vm118_vm3, %v925_v44  ;;  %v93_v52 = vpop.permute.xlu1 %92  ;;  %688 = vst.msk [vmem:[%s1161_s4 + $0x40] sm:$0xff] %vm679_vm2, %v926_v26  ;;  %689 = vst.msk [vmem:[%s1161_s4 + $0x48] sm:$0xff] %vm679_vm2, %v926_v26 }
  0x90   :  { %vm123_vm8 = vcmp.eq.s32.totalorder %v1051_v42, %v93_v52  ;;  %690 = vst.msk [vmem:[%s1161_s4 + $0x50] sm:$0xff] %vm679_vm2, %v926_v26  ;;  %691 = vst.msk [vmem:[%s1161_s4 + $0x58] sm:$0xff] %vm679_vm2, %v926_v26 }
  0x91   :  { %v81_v48 = vpop.permute.xlu0 %80  ;;  %824 = vmatprep.mubr.msk.f32.mxu1 %vm123_vm8, %v925_v44  ;;  %692 = vst.msk [vmem:[%s1161_s4 + $0x60] sm:$0xff] %vm679_vm2, %v926_v26  ;;  %693 = vst.msk [vmem:[%s1161_s4 + $0x68] sm:$0xff] %vm679_vm2, %v926_v26 }
  0x92   :  { %vm119_vm4 = vcmp.eq.s32.totalorder %v1051_v42, %v81_v48  ;;  %694 = vst.msk [vmem:[%s1161_s4 + $0x70] sm:$0xff] %vm679_vm2, %v926_v26  ;;  %695 = vst.msk [vmem:[%s1161_s4 + $0x78] sm:$0xff] %vm679_vm2, %v926_v26 }
  0x93   :  { %818 = vmatprep.mubr.msk.f32.mxu0 %vm119_vm4, %v925_v44  ;;  %v96_v53 = vpop.permute.xlu1 %95 }
  0x94   :  { %vm124_vm9 = vcmp.eq.s32.totalorder %v1051_v42, %v96_v53 }
  0x95   :  { %v84_v49 = vpop.permute.xlu0 %83  ;;  %825 = vmatmul.mubr.msk.f32.vlgmr.msra.gmra.mrb[0].mxu1 %vm124_vm9, %v925_v44 }
  0x96   :  { %vm120_vm5 = vcmp.eq.s32.totalorder %v1051_v42, %v84_v49 }
  0x97   :  { %819 = vmatmul.mubr.msk.f32.gmra.mrb[4].mxu0 %vm120_vm5, %v925_v44  ;;  %v99_v54 = vpop.permute.xlu1 %98 }
  0x98   :  { %vm125_vm10 = vcmp.eq.s32.totalorder %v1051_v42, %v99_v54 }
  0x99   :  { %v87_v50 = vpop.permute.xlu0 %86  ;;  %827 = vmatprep.mubr.msk.f32.mxu1 %vm125_vm10, %v925_v44 }
  0x9a   :  { %vm121_vm6 = vcmp.eq.s32.totalorder %v1051_v42, %v87_v50 }
  0x9b   :  { %821 = vmatprep.mubr.msk.f32.mxu0 %vm121_vm6, %v925_v44  ;;  %v102_v55 = vpop.permute.xlu1 %101 }
  0x9c   :  { %vm126_vm11 = vcmp.eq.s32.totalorder %v1051_v42, %v102_v55 }
  0x9d   :  { %v90_v51 = vpop.permute.xlu0 %89  ;;  %828 = vmatmul.mubr.msk.f32.gmra.mrb[2].mxu1 %vm126_vm11, %v925_v44 }
  0x9e   :  { %vm122_vm7 = vcmp.eq.s32.totalorder %v1051_v42, %v90_v51 }
  0x9f   :  { %822 = vmatmul.mubr.msk.f32.gmra.mrb[6].mxu0 %vm122_vm7, %v925_v44  ;;  %v105_v56 = vpop.permute.xlu1 %104 }
  0xa0   :  { %vm127_vm12 = vcmp.eq.s32.totalorder %v1051_v42, %v105_v56 }
  0xa1   :  { %830 = vmatprep.mubr.msk.f32.mxu1 %vm127_vm12, %v925_v44 }
  0xa3   :  { %v108_v57 = vpop.permute.xlu1 %107 }
  0xa4   :  { %vm128_vm13 = vcmp.eq.s32.totalorder %v1051_v42, %v108_v57 }
  0xa5   :  { %831 = vmatmul.mubr.msk.f32.gmra.mrb[4].mxu1 %vm128_vm13, %v925_v44 }
  0xa7   :  { %v111_v58 = vpop.permute.xlu1 %110 }
  0xa8   :  { %vm129_vm14 = vcmp.eq.s32.totalorder %v1051_v42, %v111_v58 }
  0xa9   :  { %833 = vmatprep.mubr.msk.f32.mxu1 %vm129_vm14, %v925_v44 }
  0xab   :  { %v114_v59 = vpop.permute.xlu1 %113 }
  0xac   :  { %vm130_vm15 = vcmp.eq.s32.totalorder %v1051_v42, %v114_v59 }
  0xad   :  { %834 = vmatmul.mubr.msk.f32.gmra.mrb[6].mxu1 %vm130_vm15, %v925_v44 }
 0x15a   :  { %v814_v60 = vpop.f32.mrb[0].mxu0 }
 0x15b   :  { %309 = vst [vmem:[#allocation2 + $0x8] sm:$0xff] %v814_v60  ;;  %326 = vmax.xlane.f32.xlu1 %v814_v60  ;;  %v229_v61 = vpop.f32.mrb[1].mxu0 }
 0x15c   :  { %308 = vst [vmem:[#allocation2] sm:$0xff] %v229_v61  ;;  %324 = vmax.xlane.f32.xlu0 %v229_v61 }
 0x162   :  { %v817_v62 = vpop.f32.mrb[2].mxu0 }
 0x163   :  { %311 = vst [vmem:[#allocation2 + $0x18] sm:$0xff] %v817_v62  ;;  %v239_v63 = vpop.f32.mrb[3].mxu0 }
 0x164   :  { %310 = vst [vmem:[#allocation2 + $0x10] sm:$0xff] %v239_v63 }
 0x168   :  { %v826_v6 = vpop.f32.mrb[0].mxu1 }
 0x169   :  { %317 = vst [vmem:[#allocation2 + $0x48] sm:$0xff] %v826_v6  ;;  %v269_v7 = vpop.f32.mrb[1].mxu1 }
 0x16a   :  { %v820_v1 = vpop.f32.mrb[4].mxu0  ;;  %316 = vst [vmem:[#allocation2 + $0x40] sm:$0xff] %v269_v7 }
 0x16b   :  { %313 = vst [vmem:[#allocation2 + $0x28] sm:$0xff] %v820_v1  ;;  %v249_v2 = vpop.f32.mrb[5].mxu0 }
 0x16c   :  { %312 = vst [vmem:[#allocation2 + $0x20] sm:$0xff] %v249_v2  ;;  %488 = vperm.xlu1 %891, %v34_v0  }
 0x170   :  { %v829_v8 = vpop.f32.mrb[2].mxu1 }
 0x171   :  { %319 = vst [vmem:[#allocation2 + $0x58] sm:$0xff] %v829_v8  ;;  %v279_v9 = vpop.f32.mrb[3].mxu1 }
 0x172   :  { %485 = vperm.xlu0 %890, %v33_v3   ;;  %v823_v4 = vpop.f32.mrb[6].mxu0  ;;  %318 = vst [vmem:[#allocation2 + $0x50] sm:$0xff] %v279_v9 }
 0x173   :  { %315 = vst [vmem:[#allocation2 + $0x38] sm:$0xff] %v823_v4  ;;  %v259_v5 = vpop.f32.mrb[7].mxu0 }
 0x174   :  { %314 = vst [vmem:[#allocation2 + $0x30] sm:$0xff] %v259_v5 }
 0x178   :  { %v832_v10 = vpop.f32.mrb[4].mxu1 }
 0x179   :  { %321 = vst [vmem:[#allocation2 + $0x68] sm:$0xff] %v832_v10  ;;  %v289_v11 = vpop.f32.mrb[5].mxu1 }
 0x17a   :  { %320 = vst [vmem:[#allocation2 + $0x60] sm:$0xff] %v289_v11 }
 0x180   :  { %v835_v12 = vpop.f32.mrb[6].mxu1 }
 0x181   :  { %323 = vst [vmem:[#allocation2 + $0x78] sm:$0xff] %v835_v12  ;;  %v299_v13 = vpop.f32.mrb[7].mxu1 }
 0x182   :  { %322 = vst [vmem:[#allocation2 + $0x70] sm:$0xff] %v299_v13 }
 0x1e8   :  { %v1075_v14 = vpop.xlane.xlu1 %326 }
 0x1e9   :  { %v357_v15 = vsub.f32 %v814_v60, %v1075_v14  ;;  %v325_v16 = vpop.xlane.xlu0 %324 }
 0x1ea   :  { %v356_v17 = vsub.f32 %v229_v61, %v325_v16 }
 0x1eb   :  { %v374_v18 = vmul.f32 1.442695, %v357_v15 }
 0x1ec   :  { %v372_v19 = vmul.f32 1.442695, %v356_v17  ;;  %v489_v23 = vpop.permute.xlu1 %488 }
 0x1ed   :  { %892 = vpow2.f32 %v374_v18  ;;  %vm533_vm1 = vcmp.eq.s32.totalorder %v1051_v42, %v489_v23 }
 0x1ee   :  { %894 = vpow2.f32 %v372_v19  ;;  %v549_v25 = vsel %vm533_vm1, %v814_v60, 0.0 }
 0x1f1   :  { %v486_v20 = vpop.permute.xlu0 %485 }
 0x1f2   :  { %vm532_vm0 = vcmp.eq.s32.totalorder %v1051_v42, %v486_v20 }
 0x1f3   :  { %v548_v24 = vsel %vm532_vm0, %v229_v61, 0.0 }
 0x1f7   :  { %v893_v21 = vpop.eup %892 }
 0x1f8   :  { %v895_v22 = vpop.eup %894  ;;  %406 = vadd.xlane.f32.xlu1 %v893_v21 }
 0x1f9   :  { %404 = vadd.xlane.f32.xlu0 %v895_v22 }
 0x1fd   :  { %564 = vadd.xlane.f32.xlu0 %v548_v24 }
 0x201   :  { %566 = vadd.xlane.f32.xlu0 %v549_v25 }
 0x202   :  { %911 = shalt.err (!%p908_p4)
}
 0x203   :  { %s912_s6 = scalar_lea.hbm %s1160_s3, 2048 }
 0x204   :  { %p913_p5 = scmp.ne.s32.totalorder %s1160_s3, %s912_s6  ;;  %p916_p6 = scmp.lt.u32.totalorder %s912_s6, %s1160_s3 }
 0x206   :  { %p918_p7 = pnand %p916_p6, %p913_p5 }
 0x208   :  { %921 = shalt.err (!%p918_p7)
}
 0x209   :  { %s928_s11 = smov 128   ;;  %s929_s12 = smov 8  }
 0x20a   :  { %707 = dma.vmem_to_hbm [thread:$0]  %s702_s1, 2048, %s1160_s3, [#allocation3], %s928_s11, %s928_s11, %s929_s12  }
 0x285   :  { %v407_v27 = vpop.xlane.xlu1 %406 }
 0x286   :  { %896 = vlog2.f32 %v407_v27  ;;  %v405_v28 = vpop.xlane.xlu0 %404 }
 0x287   :  { %898 = vlog2.f32 %v405_v28 }
 0x28a   :  { %v565_v29 = vpop.xlane.xlu0 %564 }
 0x28e   :  { %v567_v36 = vpop.xlane.xlu0 %566 }
 0x290   :  { %v897_v30 = vpop.eup %896 }
 0x291   :  { %v899_v31 = vpop.eup %898  ;;  %v439_v32 = vmul.f32 0.6931472, %v897_v30 }
 0x292   :  { %v437_v33 = vmul.f32 0.6931472, %v899_v31 }
 0x293   :  { %v469_v34 = vadd.f32 %v439_v32, %v1075_v14 }
 0x294   :  { %v468_v35 = vadd.f32 %v437_v33, %v325_v16 }
 0x295   :  { %v648_v37 = vsub.f32 %v469_v34, %v567_v36 }
 0x296   :  { %v647_v38 = vsub.f32 %v468_v35, %v565_v29 }
 0x297   :  { %681 = vst.msk [vmem:[%s1161_s4 + $0x8] sm:$0xff] %vm679_vm2, %v648_v37 }
 0x298   :  { %680 = vst.msk [vmem:[%s1161_s4] sm:$0xff] %vm679_vm2, %v647_v38 }
 0x299   :  { %922 = dma.done.wait [#allocation3], 2048  }
 0x29a   :  { %923 = vsyncadd [#allocation3], 4294965248 }
 0x29b   :  { %715 = vsyncpa [#allocation3], 1 }

</bundles_post_ra>
